<compile_context>
chip_gen: v7x
topology: tpu7x:2x2x1
jax: 0.10.0
libtpu: 0.0.40
codegen_flags: <defaults>
</compile_context>

<pallas_src>
import functools

import jax
import jax.numpy as jnp
from jax.experimental import pallas as pl
from jax.experimental.pallas import tpu as pltpu


LANE = 128      # vreg lane width: hidden/output dims padded to this
_SUBLANE = 8    # f32 sublane tiling


def _round_up(n, m):
    return ((n + m - 1) // m) * m


def _qnet_kernel(x_ref, w1p_ref, w2p_ref, out_ref):
    """One batch tile of the fused 2-layer MLP.

    x_ref   : (TB, in+1)       last column is the constant 1.0 (b1 fold)
    w1p_ref : (in+1, h_pad)    cols [0:hidden) = W1|b1, col `hidden` = carrier
    w2p_ref : (h_pad, out_pad) rows [0:hidden) = W2, row `hidden` = b2
    out_ref : (TB, out_pad)    lane-dense padded output (sliced in wrapper)
    """
    # Layer 1: bias folded into the matmul via the ones-column of x.  The
    # carrier lane comes out as exactly 1.0 and survives the ReLU.
    h = jnp.dot(x_ref[...], w1p_ref[...], preferred_element_type=jnp.float32)
    h = jnp.maximum(h, 0.0)
    # Layer 2: b2 rides on the carrier lane's row of w2p, so this is a single
    # clean 128x128 matmul.  h never leaves vregs/VMEM (fully fused).
    y = jnp.dot(h, w2p_ref[...], preferred_element_type=jnp.float32)
    out_ref[...] = y.astype(out_ref.dtype)


def pack_params(w1, b1, w2, b2):
    """Fold biases into the weights and pad to lane-dense widths (done once).

    w1: (in, hidden), b1: (hidden,), w2: (hidden, out), b2: (out,)
    Returns:
      w1p: (in+1, h_pad)   -- W1 with b1 as last row, plus a carrier column
      w2p: (h_pad, out_pad) -- W2 with b2 on the carrier row
    Padding is zeros, so padded hidden/output lanes carry exact zeros through
    ReLU and the second matmul.
    """
    in_size, hidden = w1.shape
    out_size = w2.shape[1]
    h_pad = _round_up(hidden + 1, LANE)       # +1: reserved bias-carrier lane
    out_pad = _round_up(out_size, LANE)
    b1 = jnp.reshape(b1, (hidden,)).astype(jnp.float32)
    b2 = jnp.reshape(b2, (out_size,)).astype(jnp.float32)

    w1p = jnp.zeros((in_size + 1, h_pad), jnp.float32)
    w1p = w1p.at[:in_size, :hidden].set(w1.astype(jnp.float32))
    w1p = w1p.at[in_size, :hidden].set(b1)
    w1p = w1p.at[in_size, hidden].set(1.0)    # carrier lane -> h[:, hidden]=1

    w2p = jnp.zeros((h_pad, out_pad), jnp.float32)
    w2p = w2p.at[:hidden, :out_size].set(w2.astype(jnp.float32))
    w2p = w2p.at[hidden, :out_size].set(b2)   # b2 via the carrier lane
    return w1p, w2p


@functools.partial(jax.jit, static_argnames=("out_size",))
def qnet_forward(x, w1p, w2p, *, out_size):
    """x: [B, in]; w1p/w2p from pack_params() -> [B, out_size]."""
    B, in_size = x.shape
    k = in_size + 1
    h_pad = w2p.shape[0]
    out_pad = w2p.shape[1]

    # Batch tile: large tiles amortize per-step overhead; TB multiple of 8.
    TB = min(512, _round_up(B, _SUBLANE))
    grid_b = pl.cdiv(B, TB)
    B_pad = grid_b * TB

    # Append the ones column (activates the folded b1 row and the carrier
    # lane) and zero-pad the batch to a whole number of tiles.
    x_aug = jnp.concatenate([x.astype(jnp.float32),
                             jnp.ones((B, 1), jnp.float32)], axis=1)
    if B_pad != B:
        x_aug = jnp.pad(x_aug, ((0, B_pad - B), (0, 0)))

    out = pl.pallas_call(
        _qnet_kernel,
        out_shape=jax.ShapeDtypeStruct((B_pad, out_pad), x.dtype),
        grid=(grid_b,),
        in_specs=[
            pl.BlockSpec((TB, k), lambda i: (i, 0)),            # batch tile
            pl.BlockSpec((k, h_pad), lambda i: (0, 0)),         # resident W1|b1
            pl.BlockSpec((h_pad, out_pad), lambda i: (0, 0)),   # resident W2|b2
        ],
        out_specs=pl.BlockSpec((TB, out_pad), lambda i: (i, 0)),
        compiler_params=pltpu.CompilerParams(
            # batch tiles are independent -> sharded across TCs on v7x megacore
            dimension_semantics=("parallel",)),
    )(x_aug, w1p, w2p)

    # Drop batch padding and the lane padding of the narrow output.
    return out[:B, :out_size]


def init_params(key, input_size, hidden_size, output_size, dtype=jnp.float32):
    """Init mimicking torch.nn.Linear (U(-1/sqrt(fan_in), 1/sqrt(fan_in)))."""
    k1, k2, k3, k4 = jax.random.split(key, 4)
    bound1 = 1.0 / (input_size ** 0.5)
    bound2 = 1.0 / (hidden_size ** 0.5)
    w1 = jax.random.uniform(k1, (input_size, hidden_size), dtype,
                            minval=-bound1, maxval=bound1)
    b1 = jax.random.uniform(k2, (hidden_size,), dtype,
                            minval=-bound1, maxval=bound1)
    w2 = jax.random.uniform(k3, (hidden_size, output_size), dtype,
                            minval=-bound2, maxval=bound2)
    b2 = jax.random.uniform(k4, (output_size,), dtype,
                            minval=-bound2, maxval=bound2)
    return w1, b1, w2, b2


def reference_forward(x, w1, b1, w2, b2):
    h = jnp.maximum(x @ w1 + b1, 0.0)
    return h @ w2 + b2


# TODO(synk): Linear_QNet.save() (torch.save checkpoint I/O) is host-side and
# has no Pallas equivalent; it is intentionally not implemented here.

if __name__ == "__main__":
    # Shapes consistent with the snake Q-net: 11 state features, 3 actions.
    batch, input_size, hidden_size, output_size = 2, 11, 32, 3

    key = jax.random.PRNGKey(0)
    kx, kp, kxb = jax.random.split(key, 3)
    x = jax.random.normal(kx, (batch, input_size), dtype=jnp.float32)
    w1, b1, w2, b2 = init_params(kp, input_size, hidden_size, output_size)
    w1p, w2p = pack_params(w1, b1, w2, b2)

    # Small inference-style batch (single grid step).
    out = jax.block_until_ready(qnet_forward(x, w1p, w2p, out_size=output_size))
    ref = reference_forward(x, w1, b1, w2, b2)
    assert out.shape == (batch, output_size)
    assert jnp.allclose(out, ref, atol=1e-5, rtol=1e-5), \
        "mismatch vs reference (small batch)"

    # Replay-buffer-sized batch exercises the tiled grid + batch-padding path.
    big_batch = 520
    xb = jax.random.normal(kxb, (big_batch, input_size), dtype=jnp.float32)
    outb = jax.block_until_ready(qnet_forward(xb, w1p, w2p, out_size=output_size))
    refb = reference_forward(xb, w1, b1, w2, b2)
    assert outb.shape == (big_batch, output_size)
    assert jnp.allclose(outb, refb, atol=1e-4, rtol=1e-4), \
        "mismatch vs reference (big batch)"

    print("KERNEL_OK")
</pallas_src>

<mosaic_0001>
module attributes {stable_mosaic.version = 11 : i64} {
  func.func @_qnet_kernel(%arg0: i32, %arg1: memref<8x12xf32, #tpu.memory_space<vmem>>, %arg2: memref<12x128xf32, #tpu.memory_space<vmem>>, %arg3: memref<128x128xf32, #tpu.memory_space<vmem>>, %arg4: memref<8x128xf32, #tpu.memory_space<vmem>>) attributes {dimension_semantics = [#tpu.dimension_semantics<parallel>], iteration_bounds = array<i64: 1>, scalar_prefetch = 0 : i64, scratch_operands = 0 : i64, tpu.core_type = #tpu.core_type<tc>, window_params = [{transform_indices = @transform_0, window_bounds = array<i64: 8, 12>}, {pipeline_mode = #tpu.pipeline_mode<synchronous>, transform_indices = @transform_1, window_bounds = array<i64: 12, 128>}, {pipeline_mode = #tpu.pipeline_mode<synchronous>, transform_indices = @transform_2, window_bounds = array<i64: 128, 128>}, {transform_indices = @transform_3, window_bounds = array<i64: 8, 128>}]} {
    %c0 = arith.constant 0 : index
    %c0_0 = arith.constant 0 : index
    %0 = vector.load %arg1[%c0, %c0_0] : memref<8x12xf32, #tpu.memory_space<vmem>>, vector<8x12xf32>
    %c0_1 = arith.constant 0 : index
    %c0_2 = arith.constant 0 : index
    %1 = vector.load %arg2[%c0_1, %c0_2] : memref<12x128xf32, #tpu.memory_space<vmem>>, vector<12x128xf32>
    %cst = arith.constant dense<0.000000e+00> : vector<8x128xf32>
    %2 = tpu.matmul %0, %1, %cst {dimension_numbers = #tpu.dot_dimension_numbers<[1], [0], [0], [1], [0, 0, 1, 1], [], []>} : vector<8x12xf32>, vector<12x128xf32>, vector<8x128xf32> -> vector<8x128xf32>
    %cst_3 = arith.constant 0.000000e+00 : f32
    %3 = vector.broadcast %cst_3 : f32 to vector<8x128xf32>
    %4 = arith.maximumf %2, %3 : vector<8x128xf32>
    %c0_4 = arith.constant 0 : index
    %c0_5 = arith.constant 0 : index
    %5 = vector.load %arg3[%c0_4, %c0_5] : memref<128x128xf32, #tpu.memory_space<vmem>>, vector<128x128xf32>
    %cst_6 = arith.constant dense<0.000000e+00> : vector<8x128xf32>
    %6 = tpu.matmul %4, %5, %cst_6 {dimension_numbers = #tpu.dot_dimension_numbers<[1], [0], [0], [1], [0, 0, 1, 1], [], []>} : vector<8x128xf32>, vector<128x128xf32>, vector<8x128xf32> -> vector<8x128xf32>
    %c0_7 = arith.constant 0 : index
    %c0_8 = arith.constant 0 : index
    %7 = vector.load %arg4[%c0_7, %c0_8] : memref<8x128xf32, #tpu.memory_space<vmem>>, vector<8x128xf32>
    tpu.vector_store %arg4[%c0_7, %c0_8], %6 {strides = array<i32>} : memref<8x128xf32, #tpu.memory_space<vmem>>, vector<8x128xf32>,
    return
  }
  func.func @transform_0(%arg0: i32) -> (i32, i32) {
    %c0_i32 = arith.constant 0 : i32
    %c0_i32_0 = arith.constant 0 : i32
    return %arg0, %c0_i32 : i32, i32
  }
  func.func @transform_1(%arg0: i32) -> (i32, i32) {
    %c0_i32 = arith.constant 0 : i32
    %c0_i32_0 = arith.constant 0 : i32
    %c0_i32_1 = arith.constant 0 : i32
    return %c0_i32, %c0_i32_0 : i32, i32
  }
  func.func @transform_2(%arg0: i32) -> (i32, i32) {
    %c0_i32 = arith.constant 0 : i32
    %c0_i32_0 = arith.constant 0 : i32
    %c0_i32_1 = arith.constant 0 : i32
    return %c0_i32, %c0_i32_0 : i32, i32
  }
  func.func @transform_3(%arg0: i32) -> (i32, i32) {
    %c0_i32 = arith.constant 0 : i32
    %c0_i32_0 = arith.constant 0 : i32
    return %arg0, %c0_i32 : i32, i32
  }
}

</mosaic_0001>

<bundles_post_ra>
// kernel: qnet_forward.1
= control target key start
LH: loop header
LB: loop body
LE: loop exit
PB: predicated region body
PF: predicated region fallthrough
CT: control target
= control target key end

     0   :  { %8 = vsyncpa [#allocation3], 0  ;;  %s423_s0 = inlined_call_operand.vmem [shape: f32[8,12], index: 0, kind: input, shape index: {}]   ;;  %s424_s1 = inlined_call_operand.hbm [shape: f32[12,128], index: 1, kind: input, shape index: {}]   ;;  %s425_s2 = inlined_call_operand.hbm [shape: f32[128,128], index: 2, kind: input, shape index: {}]   ;;  %s426_s3 = inlined_call_operand.vmem [shape: f32[8,128], index: 3, kind: output, shape index: {}]  }
   0x1   :  { %9 = vsyncpa [#allocation5], 0  ;;  %s365_s12 = smov [#allocation2]   ;;  %s317_s16 = scalar_lea.hbm %s424_s1, 256 }
   0x2   :  { %s17_s13 = sshll.u32 %s365_s12, 4  ;;  %p318_p0 = scmp.ne.s32.totalorder %s424_s1, %s317_s16  ;;  %s18_s13 = int_to_ptr.vmem [resolvable:$true] %s17_s13 }
   0x3   :  { %p321_p1 = scmp.lt.u32.totalorder %s317_s16, %s424_s1 }
   0x5   :  { %p323_p2 = pnand %p321_p1, %p318_p0 }
   0x7   :  { %326 = shalt.err (!%p323_p2)
}
   0x8   :  { %s327_s21 = scalar_lea.vmem %s18_s13, 256  ;;  %p332_p4 = scmp.lt.s32.totalorder %s18_s13, %s18_s13 }
   0x9   :  { %p328_p3 = scmp.ne.s32.totalorder %s18_s13, %s327_s21  ;;  %p333_p5 = scmp.lt.s32.totalorder %s327_s21, %s327_s21 }
   0xb   :  { %p334_p6 = por %p333_p5, %p332_p4 }
   0xd   :  { %p335_p7 = pnand %p334_p6, %p328_p3 }
   0xf   :  { %338 = shalt.err (!%p335_p7)
}
  0x10   :  { %s366_s22 = smov 128   ;;  %s367_s23 = smov 8  }
  0x11   :  { %23 = dma.hbm_to_vmem [thread:$0]  %s424_s1, 256, %s18_s13, [#allocation3], %s366_s22, %s366_s22, %s367_s23  }
  0x12   :  { %s368_s26 = smov [#allocation4]   ;;  %s339_s30 = scalar_lea.hbm %s425_s2, 2048 }
  0x13   :  { %s29_s27 = sshll.u32 %s368_s26, 4  ;;  %p340_p8 = scmp.ne.s32.totalorder %s425_s2, %s339_s30  ;;  %s30_s27 = int_to_ptr.vmem [resolvable:$true] %s29_s27 }
  0x14   :  { %p343_p9 = scmp.lt.u32.totalorder %s339_s30, %s425_s2 }
  0x16   :  { %p345_p10 = pnand %p343_p9, %p340_p8 }
  0x18   :  { %348 = shalt.err (!%p345_p10)
}
  0x19   :  { %s349_s8 = scalar_lea.vmem %s30_s27, 2048  ;;  %p354_p12 = scmp.lt.s32.totalorder %s30_s27, %s30_s27 }
  0x1a   :  { %p350_p11 = scmp.ne.s32.totalorder %s30_s27, %s349_s8  ;;  %p355_p13 = scmp.lt.s32.totalorder %s349_s8, %s349_s8 }
  0x1c   :  { %p356_p0 = por %p355_p13, %p354_p12 }
  0x1e   :  { %p357_p1 = pnand %p356_p0, %p350_p11 }
  0x20   :  { %360 = shalt.err (!%p357_p1)
}
  0x21   :  { %35 = dma.hbm_to_vmem [thread:$0]  %s425_s2, 2048, %s30_s27, [#allocation5], %s366_s22, %s366_s22, %s367_s23  }
  0x22   :  { %361 = dma.done.wait [#allocation3], 256  }
  0x23   :  { %362 = vsyncadd [#allocation3], 4294967040 }
  0x24   :  { %363 = dma.done.wait [#allocation5], 2048  }
  0x25   :  { %364 = vsyncadd [#allocation5], 4294965248  ;;  %v369_v0 = vmov 0.0|0.0   ;;  %vm370_vm0 = vmmov 0   ;;  %v371_v1 = vmov 0.0   ;;  %vm49_vm1 = vcmask 1043456  }
  0x26   :  { %281 = vmatprep.subr.bf16.mxu0 %v369_v0  ;;  %285 = vmatprep.subr.bf16.mxu1 %v369_v0  ;;  %v43_v2 = vld [vmem:[#allocation2] sm:$0xff]  ;;  %v44_v3 = vld [vmem:[#allocation2 + $0x8] sm:$0xf]  ;;  %vm372_vm2 = vmmov 1   ;;  %v124_v5 = vld [vmem:[#allocation4] sm:$0xff]  ;;  %vm45_vm4 = vcmask 97280  }
  0x27   :  { %243 = vmatprep.mubr.msk.f32.mxu0 %vm370_vm0, %v371_v1  ;;  %278 = vmatprep.mubr.msk.f32.mxu1 %vm370_vm0, %v371_v1  ;;  %vm283_vm3 = vmpackc.low %vm49_vm1, %vm372_vm2  ;;  %v282_v4 = vpack.c.bf16 %v44_v3, %v43_v2  ;;  %v125_v6 = vld [vmem:[#allocation4 + $0x8] sm:$0xff]  ;;  %v126_v7 = vld [vmem:[#allocation4 + $0x10] sm:$0xff] }
  0x28   :  { %v286_v8 = vpack.c.bf16 %v125_v6, %v124_v5  ;;  %v127_v9 = vld [vmem:[#allocation4 + $0x18] sm:$0xff]  ;;  %v42_v10 = vld [vmem:[%s423_s0] sm:$0xff]  ;;  %v128_v12 = vld [vmem:[#allocation4 + $0x20] sm:$0xff] }
  0x29   :  { %284 = vmatpush3.bf16.msk.msra.mxu0 %vm283_vm3, %v282_v4  ;;  %v289_v11 = vpack.c.bf16 %v127_v9, %v126_v7  ;;  %v129_v13 = vld [vmem:[#allocation4 + $0x28] sm:$0xff]  ;;  %v130_v15 = vld [vmem:[#allocation4 + $0x30] sm:$0xff]  ;;  %v131_v16 = vld [vmem:[#allocation4 + $0x38] sm:$0xff] }
  0x2a   :  { %287 = vmatpush3.bf16.msra.mxu1 %v286_v8  ;;  %v292_v14 = vpack.c.bf16 %v129_v13, %v128_v12  ;;  %v295_v17 = vpack.c.bf16 %v131_v16, %v130_v15  ;;  %v132_v18 = vld [vmem:[#allocation4 + $0x40] sm:$0xff]  ;;  %v133_v19 = vld [vmem:[#allocation4 + $0x48] sm:$0xff]  ;;  %v134_v21 = vld [vmem:[#allocation4 + $0x50] sm:$0xff] }
  0x2b   :  { %288 = vmatprep.subr.bf16.mxu1 %v369_v0  ;;  %v298_v20 = vpack.c.bf16 %v133_v19, %v132_v18  ;;  %v135_v22 = vld [vmem:[#allocation4 + $0x58] sm:$0xff]  ;;  %v136_v24 = vld [vmem:[#allocation4 + $0x60] sm:$0xff]  ;;  %v137_v25 = vld [vmem:[#allocation4 + $0x68] sm:$0xff] }
  0x2c   :  { %244 = vmatmul.mubr.msk.f32.vlgmr.msra.gmra.mrb[0].mxu0 %vm45_vm4, %v42_v10  ;;  %v301_v23 = vpack.c.bf16 %v135_v22, %v134_v21  ;;  %v304_v26 = vpack.c.bf16 %v137_v25, %v136_v24  ;;  %v138_v27 = vld [vmem:[#allocation4 + $0x70] sm:$0xff]  ;;  %v139_v28 = vld [vmem:[#allocation4 + $0x78] sm:$0xff] }
  0x2d   :  { %v307_v29 = vpack.c.bf16 %v139_v28, %v138_v27 }
  0x2e   :  { %290 = vmatpush3.bf16.msra.mxu1 %v289_v11 }
  0x2f   :  { %291 = vmatprep.subr.bf16.mxu1 %v369_v0 }
  0x32   :  { %293 = vmatpush3.bf16.msra.mxu1 %v292_v14 }
  0x33   :  { %294 = vmatprep.subr.bf16.mxu1 %v369_v0 }
  0x36   :  { %296 = vmatpush3.bf16.msra.mxu1 %v295_v17 }
  0x37   :  { %297 = vmatprep.subr.bf16.mxu1 %v369_v0 }
  0x3a   :  { %299 = vmatpush3.bf16.msra.mxu1 %v298_v20 }
  0x3b   :  { %300 = vmatprep.subr.bf16.mxu1 %v369_v0 }
  0x3e   :  { %302 = vmatpush3.bf16.msra.mxu1 %v301_v23 }
  0x3f   :  { %303 = vmatprep.subr.bf16.mxu1 %v369_v0 }
  0x42   :  { %305 = vmatpush3.bf16.msra.mxu1 %v304_v26 }
  0x43   :  { %306 = vmatprep.subr.bf16.mxu1 %v369_v0 }
  0x46   :  { %308 = vmatpush3.bf16.msra.mxu1 %v307_v29 }
  0xff   :  { %v119_v30 = vpop.f32.mrb[0].mxu0 }
 0x100   :  { %v123_v31 = vmax.f32 %v119_v30, 0.0  ;;  %v245_v32 = vpop.f32.mrb[1].mxu0 }
 0x102   :  { %279 = vmatmul.mubr.f32.vlgmr.msra.gmra.mrb[0].mxu1 %v123_v31 }
 0x1d5   :  { %v206_v33 = vpop.f32.mrb[0].mxu1 }
 0x1d6   :  { %210 = vst [vmem:[%s426_s3] sm:$0xff] %v206_v33  ;;  %v280_v34 = vpop.f32.mrb[1].mxu1 }
 0x1d7   :  { %215 = vsyncpa [#allocation3], 1 }
 0x1d8   :  { %216 = vsyncpa [#allocation5], 1 }

</bundles_post_ra>
